<compile_context>
chip_gen: v7x
topology: tpu7x:2x2x1
jax: 0.10.0
libtpu: 0.0.40
codegen_flags: <defaults>
</compile_context>

<pallas_src>
import math
from functools import partial

import jax
import jax.numpy as jnp
from jax.experimental import pallas as pl
from jax.experimental.pallas import tpu as pltpu


def _round_up(v, m):
    return ((v + m - 1) // m) * m


def _tile_and_pad(dim, target, base):
    """Pick (tile, padded_dim): tile is a multiple of `base`, at most `target`
    (unless the base-aligned dim already fits), minimizing padding while
    preferring the largest tile among equally-wasteful choices."""
    padded = _round_up(dim, base)
    if padded <= target:
        return padded, padded
    min_waste = padded - dim
    best_t, best_p, best_w = None, None, None
    for t in range(target, base - 1, -base):
        p = _round_up(dim, t)
        w = p - dim
        if best_w is None or w < best_w:
            best_t, best_p, best_w = t, p, w
        if w == min_waste:          # can't beat base-aligned padding
            break
    return best_t, best_p


def _vmem_limit_bytes():
    """Scoped-VMEM budget: 3/4 of physical VMEM, never above 96 MiB.

    v5e/v6e (128 MiB physical) -> 96 MiB; v7x (64 MiB) -> 48 MiB, which is
    also the conservative fallback if the hardware query fails."""
    phys = 64 * 1024 * 1024
    try:
        info = pltpu.get_tpu_info()
        phys = int(getattr(info, "vmem_capacity_bytes", phys)) or phys
    except Exception:
        pass
    return min((phys * 3) // 4, 96 * 1024 * 1024)


# ---------------------------------------------------------------------------
# Fast path: tiny / degenerate shapes (GammaNetwork's 1->1, 1->d, d->1).
# One grid-less kernel, exact f32 math, no padding, no pipelining overhead.
# ---------------------------------------------------------------------------
def _small_positive_linear_kernel(x_ref, w_ref, b_ref, o_ref):
    x = x_ref[...].astype(jnp.float32)
    w = jnp.logaddexp(w_ref[...].astype(jnp.float32), 0.0)    # stable softplus
    if x.shape[1] == 1:
        out = x * w                                            # (B,1)*(1,N) outer product
    else:
        out = jnp.dot(x, w, preferred_element_type=jnp.float32)
    o_ref[...] = (out + b_ref[...]).astype(o_ref.dtype)


# ---------------------------------------------------------------------------
# Tiled kernels.
# ---------------------------------------------------------------------------
def _matmul_body(x, w, b_ref, o_ref, acc_ref, k, nk):
    """Shared MXU + accumulator logic.

    nk == 1              : write straight to o_ref (no scratch, no branches).
    nk > 1, acc_ref None : f32 output block doubles as the accumulator.
    nk > 1, acc_ref set  : classic f32 scratch accumulator (non-f32 outputs)."""
    if nk == 1:
        o_ref[...] = (jnp.dot(x, w, preferred_element_type=jnp.float32)
                      + b_ref[...]).astype(o_ref.dtype)
        return

    acc = o_ref if acc_ref is None else acc_ref

    @pl.when(k == 0)
    def _init():
        acc[...] = jnp.zeros_like(acc)

    acc[...] += jnp.dot(x, w, preferred_element_type=jnp.float32)

    @pl.when(k == nk - 1)
    def _finalize():
        o_ref[...] = (acc[...] + b_ref[...]).astype(o_ref.dtype)


def _positive_linear_cached_w_kernel(x_ref, w_ref, b_ref, o_ref, w_cache,
                                     acc_ref=None, *, tk, tn, nk):
    i = pl.program_id(0)
    j = pl.program_id(1)
    k = pl.program_id(2)
    ks = pl.multiple_of(k * tk, 128)
    js = pl.multiple_of(j * tn, 128)

    # First batch-tile sweep on this core: softplus this weight tile once into
    # the persistent bf16 VMEM cache.  Later batch tiles read it from VMEM:
    # no HBM re-fetch of W and no EUP recompute per batch tile.
    @pl.when(i == 0)
    def _fill_cache():
        w_f32 = w_ref[pl.ds(ks, tk), pl.ds(js, tn)].astype(jnp.float32)
        w_cache[pl.ds(ks, tk), pl.ds(js, tn)] = (
            jnp.logaddexp(w_f32, 0.0).astype(jnp.bfloat16))

    w = w_cache[pl.ds(ks, tk), pl.ds(js, tn)]
    _matmul_body(x_ref[...], w, b_ref, o_ref, acc_ref, k, nk)


def _positive_linear_streamed_w_kernel(x_ref, w_ref, b_ref, o_ref,
                                       acc_ref=None, *, nk):
    # Fallback for weights too large to cache in VMEM: softplus fused on the
    # streamed (tk, tn) weight tile (recomputed once per batch tile).
    k = pl.program_id(2)
    w = jnp.logaddexp(w_ref[...].astype(jnp.float32), 0.0).astype(jnp.bfloat16)
    _matmul_body(x_ref[...], w, b_ref, o_ref, acc_ref, k, nk)


# ---------------------------------------------------------------------------
# Wrapper.
# ---------------------------------------------------------------------------
def positive_linear(x, w_t, bias=None, *, block_m=512, block_n=512,
                    block_k=1024, allow_weight_cache=True):
    """PositiveLinear forward: x @ softplus(w_t) + bias.

    x: [B, in_f]; w_t: [in_f, out_f] (= PyTorch weight.T, canonical layout so
    the hot path never transposes); bias: [out_f] or None.  Output in x.dtype."""
    B, in_f = x.shape
    in_f_w, out_f = w_t.shape
    assert in_f == in_f_w, (in_f, in_f_w)
    out_dtype = x.dtype
    bias_f32 = (jnp.zeros((out_f,), jnp.float32) if bias is None
                else bias.astype(jnp.float32))
    vmem_limit = _vmem_limit_bytes()

    # ---- Fast path: tiny or degenerate shapes --------------------------------
    small_bytes = 4 * (B * in_f + in_f * out_f + B * out_f + out_f)
    if small_bytes <= 8 * 1024 * 1024 and (
            small_bytes <= 256 * 1024 or in_f == 1 or out_f == 1):
        return pl.pallas_call(
            _small_positive_linear_kernel,
            out_shape=jax.ShapeDtypeStruct((B, out_f), out_dtype),
            compiler_params=pltpu.CompilerParams(vmem_limit_bytes=vmem_limit),
            cost_estimate=pl.CostEstimate(
                flops=2 * B * in_f * out_f + B * out_f,
                transcendentals=2 * in_f * out_f,
                bytes_accessed=small_bytes),
        )(x, w_t, bias_f32.reshape(1, out_f))

    # ---- Tiled path -----------------------------------------------------------
    tm, Mp = _tile_and_pad(B, block_m, 16)          # 16: bf16 x sublane packing
    tk, Kp = _tile_and_pad(in_f, block_k, 128)
    tn, Np = _tile_and_pad(out_f, block_n, 128)
    grid = (Mp // tm, Np // tn, Kp // tk)
    ni, nj, nk = grid

    # x: zero-pad (keeps the K reduction exact) and pre-cast to bf16 so the
    # kernel streams half the HBM bytes (x is re-read once per N tile).
    x_p = x
    if Mp != B or Kp != in_f:
        x_p = jnp.pad(x_p, ((0, Mp - B), (0, Kp - in_f)))
    x_p = x_p.astype(jnp.bfloat16)

    # W: pad with a large negative constant so softplus(pad) == 0 exactly ->
    # padded rows/cols can never leak into results.
    w_p = w_t
    if Kp != in_f or Np != out_f:
        w_p = jnp.pad(w_p, ((0, Kp - in_f), (0, Np - out_f)),
                      constant_values=-1e4)

    b_p = bias_f32 if Np == out_f else jnp.pad(bias_f32, (0, Np - out_f))
    b_p = b_p.reshape(1, Np)

    # f32 outputs accumulate in place (K-invariant output block stays VMEM
    # resident); other output dtypes get an f32 scratch accumulator.
    need_acc_scratch = nk > 1 and jnp.dtype(out_dtype) != jnp.dtype(jnp.float32)
    acc_scratch = ([pltpu.VMEM((tm, tn), jnp.float32)]
                   if need_acc_scratch else [])

    # Cache softplus(W) (bf16) in persistent VMEM when it fits.  Budget: full
    # f32 W input (2 pipeline buffers) + bf16 cache <= 1/3 of the scoped VMEM
    # limit, leaving the rest for the x/out tiles.
    cache_bytes = Kp * Np * (2 * w_p.dtype.itemsize + 2)
    use_cache = allow_weight_cache and cache_bytes <= vmem_limit // 3

    if use_cache:
        kernel = partial(_positive_linear_cached_w_kernel, tk=tk, tn=tn, nk=nk)
        w_spec = pl.BlockSpec((Kp, Np), lambda i, j, k: (0, 0))   # DMA'd once
        scratch = [pltpu.VMEM((Kp, Np), jnp.bfloat16)] + acc_scratch
        # Cache is filled during each core's i == 0 sweep -> the batch axis
        # must stay sequential; only the N axis is megacore-parallel (on v7x
        # this needs nj >= 2 to occupy both TensorCores).
        dims = ("arbitrary", "parallel", "arbitrary")
        w_hbm_bytes = Kp * Np * w_p.dtype.itemsize
        transcendentals = 2 * Kp * Np
    else:
        kernel = partial(_positive_linear_streamed_w_kernel, nk=nk)
        w_spec = pl.BlockSpec((tk, tn), lambda i, j, k: (k, j))
        scratch = acc_scratch
        dims = ("parallel", "parallel", "arbitrary")
        w_hbm_bytes = Kp * Np * w_p.dtype.itemsize * ni
        transcendentals = 2 * Kp * Np * ni

    out_p = pl.pallas_call(
        kernel,
        out_shape=jax.ShapeDtypeStruct((Mp, Np), out_dtype),
        grid_spec=pltpu.PrefetchScalarGridSpec(
            num_scalar_prefetch=0,
            grid=grid,
            in_specs=[
                pl.BlockSpec((tm, tk), lambda i, j, k: (i, k)),
                w_spec,
                pl.BlockSpec((1, tn), lambda i, j, k: (0, j)),   # per-N-tile DMA only
            ],
            out_specs=pl.BlockSpec((tm, tn), lambda i, j, k: (i, j)),
            scratch_shapes=scratch,
        ),
        compiler_params=pltpu.CompilerParams(
            dimension_semantics=dims,
            vmem_limit_bytes=vmem_limit,
        ),
        cost_estimate=pl.CostEstimate(
            flops=2 * Mp * Kp * Np,
            transcendentals=transcendentals,
            bytes_accessed=(Mp * Kp * 2 * nj + w_hbm_bytes + Np * 4
                            + Mp * Np * jnp.dtype(out_dtype).itemsize)),
    )(x_p, w_p, b_p)

    if Mp != B or Np != out_f:
        out_p = out_p[:B, :out_f]
    return out_p


def init_positive_linear_params(key, in_features, out_features,
                                weight_init_offset=-2):
    """Re-implementation of PositiveLinear.reset_parameters().

    Returns (w_t, bias) with w_t already in the canonical [in_f, out_f] layout
    (== PyTorch weight.T) so the forward path never pays a per-call transpose."""
    kw, kb = jax.random.split(key)
    a = math.sqrt(5.0)
    gain = math.sqrt(2.0 / (1.0 + a * a))
    w_bound = math.sqrt(3.0) * gain / math.sqrt(in_features)
    weight = jax.random.uniform(kw, (out_features, in_features), jnp.float32,
                                -w_bound, w_bound) + weight_init_offset
    b_bound = 1.0 / math.sqrt(in_features) if in_features > 0 else 0.0
    bias = jax.random.uniform(kb, (out_features,), jnp.float32, -b_bound, b_bound)
    return weight.T, bias


if __name__ == "__main__":
    key = jax.random.PRNGKey(0)
    keys = jax.random.split(key, 12)

    def reference(x, w_t, b):
        sp = jnp.logaddexp(w_t.astype(jnp.float32), 0.0)
        return jnp.dot(x.astype(jnp.float32), sp,
                       precision=jax.lax.Precision.HIGHEST) + b[None, :]

    def check(out, ref, tol):
        assert out.shape == ref.shape, (out.shape, ref.shape)
        err = float(jnp.max(jnp.abs(out - ref)))
        assert jnp.allclose(out, ref, atol=tol, rtol=tol), err

    # 1) Tiny module-sized shape -> grid-less exact-f32 fast path.
    b1, i1, o1 = 8, 32, 64
    x1 = jax.random.normal(keys[0], (b1, i1), jnp.float32)
    w1, bias1 = init_positive_linear_params(keys[1], i1, o1)
    check(jax.block_until_ready(positive_linear(x1, w1, bias1)),
          reference(x1, w1, bias1), 2e-2)

    # 2) GammaNetwork-style degenerate layers: 1 -> d and d -> 1.
    x2 = jax.random.normal(keys[2], (16, 1), jnp.float32)
    w2, bias2 = init_positive_linear_params(keys[3], 1, 128)
    check(jax.block_until_ready(positive_linear(x2, w2, bias2)),
          reference(x2, w2, bias2), 2e-2)

    x3 = jax.random.normal(keys[4], (16, 128), jnp.float32)
    w3, bias3 = init_positive_linear_params(keys[5], 128, 1)
    check(jax.block_until_ready(positive_linear(x3, w3, bias3)),
          reference(x3, w3, bias3), 2e-2)

    # 3) Larger shape -> tiled path: padding, bf16 MXU, VMEM-cached softplus(W).
    b4, i4, o4 = 640, 96, 200
    x4 = jax.random.normal(keys[6], (b4, i4), jnp.float32)
    w4, bias4 = init_positive_linear_params(keys[7], i4, o4)
    ref4 = reference(x4, w4, bias4)
    check(jax.block_until_ready(positive_linear(x4, w4, bias4)), ref4, 3e-2)

    # 3b) Same shape through the streamed-W fallback (coverage of that path).
    check(jax.block_until_ready(
        positive_linear(x4, w4, bias4, allow_weight_cache=False)), ref4, 3e-2)

    # 4) Multi-K-tile grid -> f32 output block used as the accumulator.
    b5, i5, o5 = 256, 256, 256
    x5 = jax.random.normal(keys[8], (b5, i5), jnp.float32)
    w5, bias5 = init_positive_linear_params(keys[9], i5, o5)
    check(jax.block_until_ready(positive_linear(x5, w5, bias5, block_k=128)),
          reference(x5, w5, bias5), 5e-2)

    print("KERNEL_OK")
</pallas_src>

<mosaic_0001>
module attributes {stable_mosaic.version = 11 : i64} {
  func.func @_small_positive_linear_kernel(%arg0: memref<8x32xf32, #tpu.memory_space<vmem>>, %arg1: memref<32x64xf32, #tpu.memory_space<vmem>>, %arg2: memref<1x64xf32, #tpu.memory_space<vmem>>, %arg3: memref<8x64xf32, #tpu.memory_space<vmem>>) attributes {dimension_semantics = [], scalar_prefetch = 0 : i64, scratch_operands = 0 : i64, tpu.core_type = #tpu.core_type<tc>} {
    %c0 = arith.constant 0 : index
    %c0_0 = arith.constant 0 : index
    %0 = vector.load %arg0[%c0, %c0_0] : memref<8x32xf32, #tpu.memory_space<vmem>>, vector<8x32xf32>
    %c0_1 = arith.constant 0 : index
    %c0_2 = arith.constant 0 : index
    %1 = vector.load %arg1[%c0_1, %c0_2] : memref<32x64xf32, #tpu.memory_space<vmem>>, vector<32x64xf32>
    %cst = arith.constant 0.000000e+00 : f32
    %2 = vector.broadcast %cst : f32 to vector<32x64xf32>
    %3 = arith.maximumf %1, %2 : vector<32x64xf32>
    %4 = vector.broadcast %cst : f32 to vector<32x64xf32>
    %5 = arith.subf %1, %4 : vector<32x64xf32>
    %6 = arith.cmpf one, %5, %5 : vector<32x64xf32>
    %7 = vector.broadcast %cst : f32 to vector<32x64xf32>
    %8 = arith.addf %1, %7 : vector<32x64xf32>
    %9 = math.absf %5 : vector<32x64xf32>
    %cst_3 = arith.constant 0.000000e+00 : f32
    %10 = vector.broadcast %cst_3 : f32 to vector<32x64xf32>
    %11 = arith.subf %10, %9 : vector<32x64xf32>
    %12 = math.exp %11 : vector<32x64xf32>
    %13 = math.log1p %12 : vector<32x64xf32>
    %14 = arith.addf %3, %13 : vector<32x64xf32>
    %15 = arith.select %6, %8, %14 : vector<32x64xi1>, vector<32x64xf32>
    %cst_4 = arith.constant dense<0.000000e+00> : vector<8x64xf32>
    %16 = tpu.matmul %0, %15, %cst_4 {dimension_numbers = #tpu.dot_dimension_numbers<[1], [0], [0], [1], [0, 0, 1, 1], [], []>} : vector<8x32xf32>, vector<32x64xf32>, vector<8x64xf32> -> vector<8x64xf32>
    %c0_5 = arith.constant 0 : index
    %c0_6 = arith.constant 0 : index
    %17 = vector.load %arg2[%c0_5, %c0_6] : memref<1x64xf32, #tpu.memory_space<vmem>>, vector<1x64xf32>
    %18 = vector.broadcast %17 : vector<1x64xf32> to vector<8x64xf32>
    %19 = arith.addf %16, %18 : vector<8x64xf32>
    %c0_7 = arith.constant 0 : index
    %c0_8 = arith.constant 0 : index
    %20 = vector.load %arg3[%c0_7, %c0_8] : memref<8x64xf32, #tpu.memory_space<vmem>>, vector<8x64xf32>
    tpu.vector_store %arg3[%c0_7, %c0_8], %19 {strides = array<i32>} : memref<8x64xf32, #tpu.memory_space<vmem>>, vector<8x64xf32>,
    return
  }
}

</mosaic_0001>

<bundles_post_ra>
// kernel: tpu_custom_call.1
= control target key start
LH: loop header
LB: loop body
LE: loop exit
PB: predicated region body
PF: predicated region fallthrough
CT: control target
= control target key end

     0   :  { %8 = vsyncpa [#allocation3], 0  ;;  %s456_s0 = inlined_call_operand.hbm [shape: f32[8,32], index: 0, kind: input, shape index: {}]   ;;  %s457_s1 = inlined_call_operand.hbm [shape: f32[32,64], index: 1, kind: input, shape index: {}]   ;;  %s458_s2 = inlined_call_operand.vmem [shape: f32[1,64], index: 2, kind: input, shape index: {}]   ;;  %s459_s3 = inlined_call_operand.hbm [shape: f32[8,64], index: 3, kind: output, shape index: {}]  }
   0x1   :  { %9 = vsyncpa [#allocation6], 0 }
   0x2   :  { %10 = vsyncpa [#allocation4], 0  ;;  %s337_s12 = smov [#allocation2]   ;;  %s338_s14 = smov [#allocation5]  }
   0x3   :  { %s17_s13 = sshll.u32 %s337_s12, 4  ;;  %s26_s15 = sshll.u32 %s338_s14, 4  ;;  %s18_s13 = int_to_ptr.vmem [resolvable:$true] %s17_s13  ;;  %s365_s15 = int_to_ptr.vmem [resolvable:$true] %s26_s15 }
   0x4   :  { %s265_s18 = scalar_lea.hbm %s456_s0, 128 }
   0x5   :  { %p266_p0 = scmp.ne.s32.totalorder %s456_s0, %s265_s18  ;;  %p269_p1 = scmp.lt.u32.totalorder %s265_s18, %s456_s0 }
   0x7   :  { %p271_p2 = pnand %p269_p1, %p266_p0 }
   0x9   :  { %274 = shalt.err (!%p271_p2)
}
   0xa   :  { %s275_s23 = scalar_lea.vmem %s18_s13, 128  ;;  %p280_p4 = scmp.lt.s32.totalorder %s18_s13, %s18_s13 }
   0xb   :  { %p276_p3 = scmp.ne.s32.totalorder %s18_s13, %s275_s23  ;;  %p281_p5 = scmp.lt.s32.totalorder %s275_s23, %s275_s23 }
   0xd   :  { %p282_p6 = por %p281_p5, %p280_p4 }
   0xf   :  { %p283_p7 = pnand %p282_p6, %p276_p3 }
  0x11   :  { %286 = shalt.err (!%p283_p7)
}
  0x12   :  { %20 = dma.hbm_to_vmem [thread:$0]  %s456_s0, 128, %s18_s13, [#allocation3]  }
  0x13   :  { %s287_s28 = scalar_lea.hbm %s457_s1, 512 }
  0x14   :  { %p288_p8 = scmp.ne.s32.totalorder %s457_s1, %s287_s28  ;;  %p291_p9 = scmp.lt.u32.totalorder %s287_s28, %s457_s1 }
  0x16   :  { %p293_p10 = pnand %p291_p9, %p288_p8 }
  0x18   :  { %296 = shalt.err (!%p293_p10)
}
  0x19   :  { %s297_s6 = scalar_lea.vmem %s365_s15, 512  ;;  %p302_p12 = scmp.lt.s32.totalorder %s365_s15, %s365_s15 }
  0x1a   :  { %p298_p11 = scmp.ne.s32.totalorder %s365_s15, %s297_s6  ;;  %p303_p13 = scmp.lt.s32.totalorder %s297_s6, %s297_s6 }
  0x1c   :  { %p304_p0 = por %p303_p13, %p302_p12 }
  0x1e   :  { %p305_p1 = pnand %p304_p0, %p298_p11 }
  0x20   :  { %308 = shalt.err (!%p305_p1)
}
  0x21   :  { %s339_s0 = smov 128   ;;  %s340_s7 = smov 8  }
  0x22   :  { %32 = dma.hbm_to_vmem [thread:$0]  %s457_s1, 512, %s365_s15, [#allocation6], %s339_s0, %s339_s0, %s340_s7  }
  0x23   :  { %331 = dma.done.wait [#allocation3], 128  }
  0x24   :  { %332 = vsyncadd [#allocation3], 4294967168 }
  0x25   :  { %333 = dma.done.wait [#allocation6], 512  }
  0x26   :  { %334 = vsyncadd [#allocation6], 4294966784  ;;  %v341_v0 = vmov 0.0|0.0   ;;  %vm342_vm0 = vmmov 0   ;;  %v343_v1 = vmov 0.0   ;;  %v397_v2 = vld [vmem:[#allocation5] sm:$0xff] }
  0x27   :  { %235 = vmatprep.subr.bf16.mxu0 %v341_v0  ;;  %232 = vmatprep.mubr.msk.f32.mxu0 %vm342_vm0, %v343_v1  ;;  %v399_v3 = vld [vmem:[#allocation5 + $0x8] sm:$0xff]  ;;  %v401_v4 = vld [vmem:[#allocation5 + $0x10] sm:$0xff]  ;;  %v403_v5 = vld [vmem:[#allocation5 + $0x18] sm:$0xff]  ;;  %v58_v6 = vand.u32 2147483647, %v397_v2  ;;  %v46_v39 = vmax.f32 %v397_v2, 0.0  ;;  %vm50_vm3 = vcmp.ne.f32.partialorder %v397_v2, %v397_v2 }
  0x28   :  { %v59_v7 = vand.u32 2147483647, %v399_v3  ;;  %v60_v8 = vand.u32 2147483647, %v401_v4  ;;  %v61_v9 = vand.u32 2147483647, %v403_v5  ;;  %vm51_vm5 = vcmp.ne.f32.partialorder %v399_v3, %v399_v3 }
  0x29   :  { %v62_v10 = vsub.f32 0.0, %v58_v6  ;;  %v47_v44 = vmax.f32 %v399_v3, 0.0  ;;  %v48_v50 = vmax.f32 %v401_v4, 0.0  ;;  %v49_v57 = vmax.f32 %v403_v5, 0.0  ;;  %s344_s11 = smov [#allocation7]  }
  0x2a   :  { %v63_v11 = vsub.f32 0.0, %v59_v7  ;;  %v64_v12 = vsub.f32 0.0, %v60_v8  ;;  %v65_v13 = vsub.f32 0.0, %v61_v9  ;;  %vm52_vm7 = vcmp.ne.f32.partialorder %v401_v4, %v401_v4  ;;  %s207_s12 = sshll.u32 %s344_s11, 4  ;;  %s208_s12 = int_to_ptr.vmem [resolvable:$true] %s207_s12 }
  0x2b   :  { %v66_v14 = vmul.f32 1.442695, %v62_v10  ;;  %vm53_vm8 = vcmp.ne.f32.partialorder %v403_v5, %v403_v5  ;;  %vm125_vm9 = vcmask 261120   ;;  %vm199_vm10 = vcmask 523264   ;;  %s309_s13 = scalar_lea.vmem %s208_s12, 128  ;;  %p314_p3 = scmp.lt.s32.totalorder %s208_s12, %s208_s12 }
  0x2c   :  { %v68_v15 = vmul.f32 1.442695, %v63_v11  ;;  %v70_v16 = vmul.f32 1.442695, %v64_v12  ;;  %v72_v17 = vmul.f32 1.442695, %v65_v13  ;;  %p310_p2 = scmp.ne.s32.totalorder %s208_s12, %s309_s13  ;;  %p315_p4 = scmp.lt.s32.totalorder %s309_s13, %s309_s13 }
  0x2d   :  { %249 = vpow2.f32 %v66_v14  ;;  %v41_v11 = vld [vmem:[#allocation2] sm:$0xff] }
  0x2e   :  { %251 = vpow2.f32 %v68_v15  ;;  %p316_p5 = por %p315_p4, %p314_p3 }
  0x2f   :  { %253 = vpow2.f32 %v70_v16 }
  0x30   :  { %255 = vpow2.f32 %v72_v17  ;;  %p317_p6 = pnand %p316_p5, %p310_p2 }
  0x37   :  { %v250_v18 = vpop.eup %249 }
  0x38   :  { %v252_v19 = vpop.eup %251  ;;  %v74_v20 = vadd.f32 1.0, %v250_v18  ;;  %v77_v25 = vmul.f32 -0.5, %v250_v18  ;;  %v80_v31 = vand.u32 2147483647, %v250_v18 }
  0x39   :  { %v254_v21 = vpop.eup %253  ;;  %v83_v22 = vadd.f32 1.0, %v252_v19  ;;  %v86_v26 = vmul.f32 -0.5, %v252_v19  ;;  %v89_v33 = vand.u32 2147483647, %v252_v19 }
  0x3a   :  { %v256_v23 = vpop.eup %255  ;;  %257 = vlog2.f32 %v74_v20  ;;  %v92_v24 = vadd.f32 1.0, %v254_v21  ;;  %v95_v28 = vmul.f32 -0.5, %v254_v21  ;;  %v78_v29 = vadd.f32 1.0, %v77_v25 }
  0x3b   :  { %259 = vlog2.f32 %v83_v22  ;;  %v101_v27 = vadd.f32 1.0, %v256_v23  ;;  %v104_v30 = vmul.f32 -0.5, %v256_v23  ;;  %v87_v32 = vadd.f32 1.0, %v86_v26 }
  0x3c   :  { %261 = vlog2.f32 %v92_v24  ;;  %v96_v34 = vadd.f32 1.0, %v95_v28  ;;  %v98_v35 = vand.u32 2147483647, %v254_v21  ;;  %v79_v36 = vmul.f32 %v250_v18, %v78_v29 }
  0x3d   :  { %263 = vlog2.f32 %v101_v27  ;;  %v105_v37 = vadd.f32 1.0, %v104_v30  ;;  %vm410_vm1 = vcmp.lt.f32.partialorder %v80_v31, 0.0004427343  ;;  %v88_v41 = vmul.f32 %v252_v19, %v87_v32 }
  0x3e   :  { %v107_v42 = vand.u32 2147483647, %v256_v23  ;;  %vm415_vm2 = vcmp.lt.f32.partialorder %v89_v33, 0.0004427343  ;;  %v97_v47 = vmul.f32 %v254_v21, %v96_v34  ;;  %vm99_vm4 = vcmp.lt.f32.partialorder %v98_v35, 0.0004427343 }
  0x3f   :  { %v106_v53 = vmul.f32 %v256_v23, %v105_v37 }
  0x40   :  { %vm108_vm6 = vcmp.lt.f32.partialorder %v107_v42, 0.0004427343 }
  0x44   :  { %v258_v38 = vpop.eup %257 }
  0x45   :  { %v260_v43 = vpop.eup %259  ;;  %v76_v45 = vmul.f32 0.6931472, %v258_v38 }
  0x46   :  { %v262_v48 = vpop.eup %261  ;;  %v85_v49 = vmul.f32 0.6931472, %v260_v43 }
  0x47   :  { %v82_v51 = vsel %vm410_vm1, %v79_v36, %v76_v45  ;;  %v94_v52 = vmul.f32 0.6931472, %v262_v48  ;;  %v264_v54 = vpop.eup %263 }
  0x48   :  { %v91_v55 = vsel %vm415_vm2, %v88_v41, %v85_v49  ;;  %v110_v56 = vadd.f32 %v82_v51, %v46_v39  ;;  %v103_v60 = vmul.f32 0.6931472, %v264_v54 }
  0x49   :  { %v111_v58 = vadd.f32 %v91_v55, %v47_v44  ;;  %v100_v59 = vsel %vm99_vm4, %v97_v47, %v94_v52 }
  0x4a   :  { %v114_v61 = vsel %vm50_vm3, %v397_v2, %v110_v56  ;;  %v112_v62 = vadd.f32 %v100_v59, %v48_v50  ;;  %v109_v1 = vsel %vm108_vm6, %v106_v53, %v103_v60  ;;  %v217_v2 = vld [vmem:[%s458_s2] ss:$0 sm:$0xff] }
  0x4b   :  { %v115_v63 = vsel %vm51_vm5, %v399_v3, %v111_v58  ;;  %v113_v7 = vadd.f32 %v109_v1, %v49_v57 }
  0x4c   :  { %v236_v6 = vpack.c.bf16 %v115_v63, %v114_v61  ;;  %v116_v8 = vsel %vm52_vm7, %v401_v4, %v112_v62 }
  0x4d   :  { %v117_v9 = vsel %vm53_vm8, %v403_v5, %v113_v7 }
  0x4e   :  { %237 = vmatpush3.bf16.msra.mxu0 %v236_v6  ;;  %v239_v10 = vpack.c.bf16 %v117_v9, %v116_v8 }
  0x4f   :  { %238 = vmatprep.subr.bf16.mxu0 %v341_v0 }
  0x52   :  { %240 = vmatpush3.bf16.msra.mxu0 %v239_v10 }
  0x55   :  { %233 = vmatmul.mubr.msk.f32.vlgmr.msra.gmra.mrb[0].mxu0 %vm125_vm9, %v41_v11 }
 0x128   :  { %v195_v3 = vpop.f32.mrb[0].mxu0 }
 0x129   :  { %v196_v12 = vadd.f32 %v217_v2, %v195_v3  ;;  %v234_v4 = vpop.f32.mrb[1].mxu0 }
 0x12b   :  { %200 = vst.msk [vmem:[#allocation7] sm:$0xff] %vm199_vm10, %v196_v12 }
 0x12c   :  { %320 = shalt.err (!%p317_p6)
}
 0x12d   :  { %s321_s16 = scalar_lea.hbm %s459_s3, 128 }
 0x12e   :  { %p322_p7 = scmp.ne.s32.totalorder %s459_s3, %s321_s16  ;;  %p325_p8 = scmp.lt.u32.totalorder %s321_s16, %s459_s3 }
 0x130   :  { %p327_p9 = pnand %p325_p8, %p322_p7 }
 0x132   :  { %330 = shalt.err (!%p327_p9)
}
 0x133   :  { %210 = dma.vmem_to_hbm [thread:$0]  %s208_s12, 128, %s459_s3, [#allocation4]  }
 0x134   :  { %335 = dma.done.wait [#allocation4], 128  }
 0x135   :  { %336 = vsyncadd [#allocation4], 4294967168 }
 0x136   :  { %214 = vsyncpa [#allocation3], 1 }
 0x137   :  { %215 = vsyncpa [#allocation6], 1 }
 0x138   :  { %216 = vsyncpa [#allocation4], 1 }

</bundles_post_ra>
